<compile_context>
chip_gen: v7x
topology: tpu7x:2x2x1
jax: 0.10.0
libtpu: 0.0.40
codegen_flags: <defaults>
</compile_context>

<pallas_src>
import functools
import math

import jax
import jax.numpy as jnp
from jax.experimental import pallas as pl
from jax.experimental.pallas import tpu as pltpu


def _round_up(n, m):
    return ((n + m - 1) // m) * m


def _pick_pack(d, out_dim, max_pack=8, max_weight_bytes=4 << 20):
    """Smallest row-packing factor making the output (and ideally the input)
    lane-dense (multiple of 128), with a cap on the block-diagonal weight size."""
    best_out = None
    best_both = None
    for r in range(1, max_pack + 1):
        w_bytes = (r * d) * (r * out_dim) * 4
        if w_bytes > max_weight_bytes:
            break
        out_ok = (r * out_dim) % 128 == 0
        in_ok = (r * d) % 128 == 0
        if out_ok and best_out is None:
            best_out = r
        if out_ok and in_ok and best_both is None:
            best_both = r
            break
    return best_both or best_out or 1


def fuse_fan_params(wp, bp, wg, bg, pack):
    """Init-time parameter fusion (hoisted out of the per-call path).

    Returns (w_big, b_big):
      w_big: (pack*D, pack*out_dim) block-diagonal replication of [Wp | Wp | Wg]
      b_big: (1, pack*out_dim)      tiled                        [bp | bp | bg]
    """
    d, p_out = wp.shape
    g_out = wg.shape[1]
    out_dim = 2 * p_out + g_out
    w1 = jnp.concatenate([wp, wp, wg], axis=1)            # (D, out_dim)
    b1 = jnp.concatenate([bp, bp, bg], axis=1)            # (1, out_dim)
    if pack == 1:
        return w1, b1
    w_big = jnp.zeros((pack * d, pack * out_dim), w1.dtype)
    for j in range(pack):
        w_big = w_big.at[j * d:(j + 1) * d, j * out_dim:(j + 1) * out_dim].set(w1)
    b_big = jnp.tile(b1, (1, pack))
    return w_big, b_big


def _fan_kernel(x_ref, w_ref, b_ref, out_ref, *, p_out, out_dim, pack):
    x = x_ref[...]                                               # (tm, pack*D)

    # Single MXU pass; y already has the final [p | p | g] column layout
    # (replicated `pack` times along lanes).
    y = jnp.dot(x, w_ref[...], preferred_element_type=jnp.float32) + b_ref[...]

    # Lane-class masks (cos / sin / gelu) built from a 2-D iota — no slices,
    # no concatenates, no XLU work.
    lane = jax.lax.broadcasted_iota(jnp.int32, y.shape, 1)
    is_cos = lane < p_out
    is_sin = (lane >= p_out) & (lane < 2 * p_out)
    for j in range(1, pack):
        base = j * out_dim
        is_cos = is_cos | ((lane >= base) & (lane < base + p_out))
        is_sin = is_sin | ((lane >= base + p_out) & (lane < base + 2 * p_out))

    cos_y = jnp.cos(y)
    sin_y = jnp.sin(y)
    # Exact (erf-based) GELU, matching torch.nn.functional.gelu default.
    gelu_y = 0.5 * y * (1.0 + jax.lax.erf(y * (1.0 / math.sqrt(2.0))))

    out = jnp.where(is_cos, cos_y, jnp.where(is_sin, sin_y, gelu_y))
    out_ref[...] = out.astype(out_ref.dtype)                    # one full-width store


def fan_layer(x2d, w_big, b_big, *, p_out, out_dim, pack, tile_tokens=8192):
    """x2d: (N, D) tokens-major input.
    w_big/b_big: pre-fused params from fuse_fan_params (built once at init).
    Returns (N, out_dim) = [cos(p) | sin(p) | gelu(g)]."""
    N, D = x2d.shape
    width = pack * out_dim
    assert w_big.shape == (pack * D, width)
    assert b_big.shape == (1, width)

    # Packed-row geometry (f32 -> 8-sublane rounding; use 16 for bf16 inputs).
    n_packed = -(-N // pack)
    tm_pref = max(8, tile_tokens // pack)
    tm_full = _round_up(max(n_packed, 1), 8)
    tm = _round_up(max(8, min(tm_pref, tm_full)), 8)
    # v7x megacore: if a large problem would otherwise be a single grid step,
    # halve the tile so the "parallel" axis can shard across both TensorCores.
    if tm >= tm_full and n_packed >= 256:
        tm = _round_up((n_packed + 1) // 2, 8)

    n_packed_pad = _round_up(n_packed, tm)
    n_tok_pad = n_packed_pad * pack
    x_pad = x2d if n_tok_pad == N else jnp.pad(x2d, ((0, n_tok_pad - N), (0, 0)))
    x_packed = x_pad.reshape(n_packed_pad, pack * D)             # lane-dense rows

    kernel = functools.partial(_fan_kernel, p_out=p_out, out_dim=out_dim, pack=pack)
    out = pl.pallas_call(
        kernel,
        out_shape=jax.ShapeDtypeStruct((n_packed_pad, width), x2d.dtype),
        grid_spec=pltpu.PrefetchScalarGridSpec(
            num_scalar_prefetch=0,
            grid=(n_packed_pad // tm,),
            in_specs=[
                pl.BlockSpec((tm, pack * D), lambda i: (i, 0)),        # x tile
                pl.BlockSpec((pack * D, width), lambda i: (0, 0)),     # fused W (resident)
                pl.BlockSpec((1, width), lambda i: (0, 0)),            # fused b (resident)
            ],
            out_specs=pl.BlockSpec((tm, width), lambda i: (i, 0)),
        ),
        compiler_params=pltpu.CompilerParams(
            dimension_semantics=("parallel",)),
    )(x_packed, w_big, b_big)

    out_tok = out.reshape(n_tok_pad, out_dim)                    # free, rows contiguous
    return out_tok if n_tok_pad == N else out_tok[:N]


def fan_layer_ref(x2d, wp, bp, wg, bg):
    p = x2d @ wp + bp
    g = x2d @ wg + bg
    g = 0.5 * g * (1.0 + jax.lax.erf(g * (1.0 / math.sqrt(2.0))))
    return jnp.concatenate([jnp.cos(p), jnp.sin(p), g], axis=-1)


if __name__ == "__main__":
    # Module config (FANLayer(input_dim=32, output_dim=64, p_ratio=0.25))
    batch, seq = 2, 8
    input_dim, output_dim, p_ratio = 32, 64, 0.25
    p_out = int(output_dim * p_ratio)            # 16
    g_out = output_dim - 2 * p_out               # 32

    key = jax.random.PRNGKey(0)
    kx, kwp, kbp, kwg, kbg = jax.random.split(key, 5)

    # Deterministic PyTorch-Linear-style init: U(-1/sqrt(fan_in), 1/sqrt(fan_in))
    bound = 1.0 / math.sqrt(input_dim)
    wp = jax.random.uniform(kwp, (input_dim, p_out), jnp.float32, -bound, bound)
    bp = jax.random.uniform(kbp, (1, p_out), jnp.float32, -bound, bound)
    wg = jax.random.uniform(kwg, (input_dim, g_out), jnp.float32, -bound, bound)
    bg = jax.random.uniform(kbg, (1, g_out), jnp.float32, -bound, bound)

    # Init-time fusion (done once, outside the per-call path).
    pack = _pick_pack(input_dim, output_dim)                      # -> 4 here
    w_big, b_big = fuse_fan_params(wp, bp, wg, bg, pack)
    w_big, b_big = jax.block_until_ready((w_big, b_big))

    x = jax.random.normal(kx, (batch, seq, input_dim), jnp.float32)
    x2d = x.reshape(batch * seq, input_dim)

    out2d = fan_layer(x2d, w_big, b_big, p_out=p_out, out_dim=output_dim, pack=pack)
    out = out2d.reshape(batch, seq, output_dim)
    jax.block_until_ready(out)

    ref = fan_layer_ref(x2d, wp, bp, wg, bg).reshape(batch, seq, output_dim)
    assert out.shape == (batch, seq, output_dim)
    assert jnp.allclose(out, ref, atol=1e-5, rtol=1e-5), "mismatch vs reference"

    # Exercise the padded-tail path (N not a multiple of pack / tile / 8).
    x_odd = jax.random.normal(jax.random.PRNGKey(1), (15, input_dim), jnp.float32)
    out_odd = fan_layer(x_odd, w_big, b_big, p_out=p_out, out_dim=output_dim, pack=pack)
    jax.block_until_ready(out_odd)
    ref_odd = fan_layer_ref(x_odd, wp, bp, wg, bg)
    assert out_odd.shape == (15, output_dim)
    assert jnp.allclose(out_odd, ref_odd, atol=1e-5, rtol=1e-5), "tail mismatch"

    print("KERNEL_OK")
</pallas_src>

<mosaic_0001>
module attributes {stable_mosaic.version = 11 : i64} {
  func.func @_fan_kernel(%arg0: i32, %arg1: memref<8x128xf32, #tpu.memory_space<vmem>>, %arg2: memref<128x256xf32, #tpu.memory_space<vmem>>, %arg3: memref<1x256xf32, #tpu.memory_space<vmem>>, %arg4: memref<8x256xf32, #tpu.memory_space<vmem>>) attributes {dimension_semantics = [#tpu.dimension_semantics<parallel>], iteration_bounds = array<i64: 1>, scalar_prefetch = 0 : i64, scratch_operands = 0 : i64, tpu.core_type = #tpu.core_type<tc>, window_params = [{transform_indices = @transform_0, window_bounds = array<i64: 8, 128>}, {pipeline_mode = #tpu.pipeline_mode<synchronous>, transform_indices = @transform_1, window_bounds = array<i64: 128, 256>}, {pipeline_mode = #tpu.pipeline_mode<synchronous>, transform_indices = @transform_2, window_bounds = array<i64: 1, 256>}, {transform_indices = @transform_3, window_bounds = array<i64: 8, 256>}]} {
    %c0 = arith.constant 0 : index
    %c0_0 = arith.constant 0 : index
    %0 = vector.load %arg1[%c0, %c0_0] : memref<8x128xf32, #tpu.memory_space<vmem>>, vector<8x128xf32>
    %c0_1 = arith.constant 0 : index
    %c0_2 = arith.constant 0 : index
    %1 = vector.load %arg2[%c0_1, %c0_2] : memref<128x256xf32, #tpu.memory_space<vmem>>, vector<128x256xf32>
    %cst = arith.constant dense<0.000000e+00> : vector<8x256xf32>
    %2 = tpu.matmul %0, %1, %cst {dimension_numbers = #tpu.dot_dimension_numbers<[1], [0], [0], [1], [0, 0, 1, 1], [], []>} : vector<8x128xf32>, vector<128x256xf32>, vector<8x256xf32> -> vector<8x256xf32>
    %c0_3 = arith.constant 0 : index
    %c0_4 = arith.constant 0 : index
    %3 = vector.load %arg3[%c0_3, %c0_4] : memref<1x256xf32, #tpu.memory_space<vmem>>, vector<1x256xf32>
    %4 = vector.broadcast %3 : vector<1x256xf32> to vector<8x256xf32>
    %5 = arith.addf %2, %4 : vector<8x256xf32>
    %6 = tpu.iota {dimensions = array<i32: 1>} : vector<8x256xi32>
    %c16_i32 = arith.constant 16 : i32
    %7 = vector.broadcast %c16_i32 : i32 to vector<8x256xi32>
    %8 = arith.cmpi slt, %6, %7 : vector<8x256xi32>
    %c16_i32_5 = arith.constant 16 : i32
    %9 = vector.broadcast %c16_i32_5 : i32 to vector<8x256xi32>
    %10 = arith.cmpi sge, %6, %9 : vector<8x256xi32>
    %c32_i32 = arith.constant 32 : i32
    %11 = vector.broadcast %c32_i32 : i32 to vector<8x256xi32>
    %12 = arith.cmpi slt, %6, %11 : vector<8x256xi32>
    %13 = arith.andi %10, %12 : vector<8x256xi1>
    %c64_i32 = arith.constant 64 : i32
    %14 = vector.broadcast %c64_i32 : i32 to vector<8x256xi32>
    %15 = arith.cmpi sge, %6, %14 : vector<8x256xi32>
    %c80_i32 = arith.constant 80 : i32
    %16 = vector.broadcast %c80_i32 : i32 to vector<8x256xi32>
    %17 = arith.cmpi slt, %6, %16 : vector<8x256xi32>
    %18 = arith.andi %15, %17 : vector<8x256xi1>
    %19 = arith.ori %8, %18 : vector<8x256xi1>
    %c80_i32_6 = arith.constant 80 : i32
    %20 = vector.broadcast %c80_i32_6 : i32 to vector<8x256xi32>
    %21 = arith.cmpi sge, %6, %20 : vector<8x256xi32>
    %c96_i32 = arith.constant 96 : i32
    %22 = vector.broadcast %c96_i32 : i32 to vector<8x256xi32>
    %23 = arith.cmpi slt, %6, %22 : vector<8x256xi32>
    %24 = arith.andi %21, %23 : vector<8x256xi1>
    %25 = arith.ori %13, %24 : vector<8x256xi1>
    %c128_i32 = arith.constant 128 : i32
    %26 = vector.broadcast %c128_i32 : i32 to vector<8x256xi32>
    %27 = arith.cmpi sge, %6, %26 : vector<8x256xi32>
    %c144_i32 = arith.constant 144 : i32
    %28 = vector.broadcast %c144_i32 : i32 to vector<8x256xi32>
    %29 = arith.cmpi slt, %6, %28 : vector<8x256xi32>
    %30 = arith.andi %27, %29 : vector<8x256xi1>
    %31 = arith.ori %19, %30 : vector<8x256xi1>
    %c144_i32_7 = arith.constant 144 : i32
    %32 = vector.broadcast %c144_i32_7 : i32 to vector<8x256xi32>
    %33 = arith.cmpi sge, %6, %32 : vector<8x256xi32>
    %c160_i32 = arith.constant 160 : i32
    %34 = vector.broadcast %c160_i32 : i32 to vector<8x256xi32>
    %35 = arith.cmpi slt, %6, %34 : vector<8x256xi32>
    %36 = arith.andi %33, %35 : vector<8x256xi1>
    %37 = arith.ori %25, %36 : vector<8x256xi1>
    %c192_i32 = arith.constant 192 : i32
    %38 = vector.broadcast %c192_i32 : i32 to vector<8x256xi32>
    %39 = arith.cmpi sge, %6, %38 : vector<8x256xi32>
    %c208_i32 = arith.constant 208 : i32
    %40 = vector.broadcast %c208_i32 : i32 to vector<8x256xi32>
    %41 = arith.cmpi slt, %6, %40 : vector<8x256xi32>
    %42 = arith.andi %39, %41 : vector<8x256xi1>
    %43 = arith.ori %31, %42 : vector<8x256xi1>
    %c208_i32_8 = arith.constant 208 : i32
    %44 = vector.broadcast %c208_i32_8 : i32 to vector<8x256xi32>
    %45 = arith.cmpi sge, %6, %44 : vector<8x256xi32>
    %c224_i32 = arith.constant 224 : i32
    %46 = vector.broadcast %c224_i32 : i32 to vector<8x256xi32>
    %47 = arith.cmpi slt, %6, %46 : vector<8x256xi32>
    %48 = arith.andi %45, %47 : vector<8x256xi1>
    %49 = arith.ori %37, %48 : vector<8x256xi1>
    %50 = math.cos %5 : vector<8x256xf32>
    %51 = math.sin %5 : vector<8x256xf32>
    %cst_9 = arith.constant 5.000000e-01 : f32
    %52 = vector.broadcast %cst_9 : f32 to vector<8x256xf32>
    %53 = arith.mulf %52, %5 : vector<8x256xf32>
    %cst_10 = arith.constant 0.707106769 : f32
    %54 = vector.broadcast %cst_10 : f32 to vector<8x256xf32>
    %55 = arith.mulf %5, %54 : vector<8x256xf32>
    %56 = math.erf %55 : vector<8x256xf32>
    %cst_11 = arith.constant 1.000000e+00 : f32
    %57 = vector.broadcast %cst_11 : f32 to vector<8x256xf32>
    %58 = arith.addf %57, %56 : vector<8x256xf32>
    %59 = arith.mulf %53, %58 : vector<8x256xf32>
    %60 = arith.select %49, %51, %59 : vector<8x256xi1>, vector<8x256xf32>
    %61 = arith.select %43, %50, %60 : vector<8x256xi1>, vector<8x256xf32>
    %c0_12 = arith.constant 0 : index
    %c0_13 = arith.constant 0 : index
    %62 = vector.load %arg4[%c0_12, %c0_13] : memref<8x256xf32, #tpu.memory_space<vmem>>, vector<8x256xf32>
    tpu.vector_store %arg4[%c0_12, %c0_13], %61 {strides = array<i32>} : memref<8x256xf32, #tpu.memory_space<vmem>>, vector<8x256xf32>,
    return
  }
  func.func @transform_0(%arg0: i32) -> (i32, i32) {
    %c0_i32 = arith.constant 0 : i32
    %c0_i32_0 = arith.constant 0 : i32
    return %arg0, %c0_i32 : i32, i32
  }
  func.func @transform_1(%arg0: i32) -> (i32, i32) {
    %c0_i32 = arith.constant 0 : i32
    %c0_i32_0 = arith.constant 0 : i32
    %c0_i32_1 = arith.constant 0 : i32
    return %c0_i32, %c0_i32_0 : i32, i32
  }
  func.func @transform_2(%arg0: i32) -> (i32, i32) {
    %c0_i32 = arith.constant 0 : i32
    %c0_i32_0 = arith.constant 0 : i32
    %c0_i32_1 = arith.constant 0 : i32
    return %c0_i32, %c0_i32_0 : i32, i32
  }
  func.func @transform_3(%arg0: i32) -> (i32, i32) {
    %c0_i32 = arith.constant 0 : i32
    %c0_i32_0 = arith.constant 0 : i32
    return %arg0, %c0_i32 : i32, i32
  }
}

</mosaic_0001>

<bundles_post_ra>
// kernel: tpu_custom_call.1
= control target key start
LH: loop header
LB: loop body
LE: loop exit
PB: predicated region body
PF: predicated region fallthrough
CT: control target
= control target key end

     0   :  { %8 = vsyncpa [#allocation3], 0  ;;  %s1024_s0 = inlined_call_operand.hbm [shape: f32[8,128], index: 0, kind: input, shape index: {}]   ;;  %s1025_s1 = inlined_call_operand.hbm [shape: f32[128,256], index: 1, kind: input, shape index: {}]   ;;  %s1026_s2 = inlined_call_operand.vmem [shape: f32[1,256], index: 2, kind: input, shape index: {}]   ;;  %s1027_s3 = inlined_call_operand.hbm [shape: f32[8,256], index: 3, kind: output, shape index: {}]  }
   0x1   :  { %9 = vsyncpa [#allocation6], 0 }
   0x2   :  { %10 = vsyncpa [#allocation4], 0  ;;  %s814_s12 = smov [#allocation2]   ;;  %s815_s14 = smov [#allocation5]  }
   0x3   :  { %s17_s13 = sshll.u32 %s814_s12, 4  ;;  %s26_s15 = sshll.u32 %s815_s14, 4  ;;  %s18_s13 = int_to_ptr.vmem [resolvable:$true] %s17_s13  ;;  %s846_s15 = int_to_ptr.vmem [resolvable:$true] %s26_s15 }
   0x4   :  { %s742_s18 = scalar_lea.hbm %s1024_s0, 128 }
   0x5   :  { %p743_p0 = scmp.ne.s32.totalorder %s1024_s0, %s742_s18  ;;  %p746_p1 = scmp.lt.u32.totalorder %s742_s18, %s1024_s0 }
   0x7   :  { %p748_p2 = pnand %p746_p1, %p743_p0 }
   0x9   :  { %751 = shalt.err (!%p748_p2)
}
   0xa   :  { %s752_s23 = scalar_lea.vmem %s18_s13, 128  ;;  %p757_p4 = scmp.lt.s32.totalorder %s18_s13, %s18_s13 }
   0xb   :  { %p753_p3 = scmp.ne.s32.totalorder %s18_s13, %s752_s23  ;;  %p758_p5 = scmp.lt.s32.totalorder %s752_s23, %s752_s23 }
   0xd   :  { %p759_p6 = por %p758_p5, %p757_p4 }
   0xf   :  { %p760_p7 = pnand %p759_p6, %p753_p3 }
  0x11   :  { %763 = shalt.err (!%p760_p7)
}
  0x12   :  { %20 = dma.hbm_to_vmem [thread:$0]  %s1024_s0, 128, %s18_s13, [#allocation3]  }
  0x13   :  { %s764_s28 = scalar_lea.hbm %s1025_s1, 4096 }
  0x14   :  { %p765_p8 = scmp.ne.s32.totalorder %s1025_s1, %s764_s28  ;;  %p768_p9 = scmp.lt.u32.totalorder %s764_s28, %s1025_s1 }
  0x16   :  { %p770_p10 = pnand %p768_p9, %p765_p8 }
  0x18   :  { %773 = shalt.err (!%p770_p10)
}
  0x19   :  { %s774_s6 = scalar_lea.vmem %s846_s15, 4096  ;;  %p779_p12 = scmp.lt.s32.totalorder %s846_s15, %s846_s15 }
  0x1a   :  { %p775_p11 = scmp.ne.s32.totalorder %s846_s15, %s774_s6  ;;  %p780_p13 = scmp.lt.s32.totalorder %s774_s6, %s774_s6 }
  0x1c   :  { %p781_p0 = por %p780_p13, %p779_p12 }
  0x1e   :  { %p782_p1 = pnand %p781_p0, %p775_p11 }
  0x20   :  { %785 = shalt.err (!%p782_p1)
}
  0x21   :  { %s816_s0 = smov 256   ;;  %s817_s7 = smov 16  }
  0x22   :  { %32 = dma.hbm_to_vmem [thread:$0]  %s1025_s1, 4096, %s846_s15, [#allocation6], %s816_s0, %s816_s0, %s817_s7  }
  0x23   :  { %808 = dma.done.wait [#allocation3], 128  }
  0x24   :  { %809 = vsyncadd [#allocation3], 4294967168 }
  0x25   :  { %810 = dma.done.wait [#allocation6], 4096  }
  0x26   :  { %811 = vsyncadd [#allocation6], 4294963200  ;;  %v818_v0 = vmov 0.0   ;;  %v43_v1 = vld [vmem:[#allocation5 + $0x8] sm:$0xff]  ;;  %v45_v2 = vld [vmem:[#allocation5 + $0x18] sm:$0xff]  ;;  %v76_v50 = vlaneseq }
  0x27   :  { %150 = vmatprep.mubr.f32.mxu0 %v818_v0  ;;  %v42_v3 = vld [vmem:[#allocation5] sm:$0xff]  ;;  %v678_v4 = vpack.c.bf16 %v45_v2, %v43_v1  ;;  %v44_v5 = vld [vmem:[#allocation5 + $0x10] sm:$0xff]  ;;  %v47_v6 = vld [vmem:[#allocation5 + $0x28] sm:$0xff] }
  0x28   :  { %v49_v7 = vld [vmem:[#allocation5 + $0x38] sm:$0xff]  ;;  %v680_v8 = vpack.c.bf16 %v44_v5, %v42_v3  ;;  %v46_v10 = vld [vmem:[#allocation5 + $0x20] sm:$0xff]  ;;  %v48_v11 = vld [vmem:[#allocation5 + $0x30] sm:$0xff]  ;;  %v77_v51 = vshrl.u32 %v76_v50, 7 }
  0x29   :  { %v682_v9 = vpack.c.bf16 %v49_v7, %v47_v6  ;;  %v51_v12 = vld [vmem:[#allocation5 + $0x48] sm:$0xff]  ;;  %679 = vmatprep.subr.bf16.mxu0 %v678_v4  ;;  %v53_v13 = vld [vmem:[#allocation5 + $0x58] sm:$0xff]  ;;  %v684_v14 = vpack.c.bf16 %v48_v11, %v46_v10  ;;  %v50_v16 = vld [vmem:[#allocation5 + $0x40] sm:$0xff] }
  0x2a   :  { %681 = vmatpush1.bf16.msra.mxu0 %v680_v8  ;;  %v686_v15 = vpack.c.bf16 %v53_v13, %v51_v12  ;;  %v52_v17 = vld [vmem:[#allocation5 + $0x50] sm:$0xff]  ;;  %v55_v18 = vld [vmem:[#allocation5 + $0x68] sm:$0xff]  ;;  %v57_v19 = vld [vmem:[#allocation5 + $0x78] sm:$0xff]  ;;  %v78_v52 = vsub.s32 0, %v77_v51  ;;  %v82_v54 = vsub.s32 1, %v77_v51 }
  0x2b   :  { %683 = vmatprep.subr.bf16.mxu0 %v682_v9  ;;  %v688_v20 = vpack.c.bf16 %v52_v17, %v50_v16  ;;  %v690_v21 = vpack.c.bf16 %v57_v19, %v55_v18  ;;  %v54_v22 = vld [vmem:[#allocation5 + $0x60] sm:$0xff]  ;;  %v56_v23 = vld [vmem:[#allocation5 + $0x70] sm:$0xff]  ;;  %v59_v24 = vld [vmem:[#allocation5 + $0x88] sm:$0xff] }
  0x2c   :  { %v61_v25 = vld [vmem:[#allocation5 + $0x98] sm:$0xff]  ;;  %v692_v26 = vpack.c.bf16 %v56_v23, %v54_v22  ;;  %v58_v28 = vld [vmem:[#allocation5 + $0x80] sm:$0xff]  ;;  %v60_v29 = vld [vmem:[#allocation5 + $0x90] sm:$0xff]  ;;  %v820_v23 = vmov 2475754826  }
  0x2d   :  { %v694_v27 = vpack.c.bf16 %v61_v25, %v59_v24  ;;  %v63_v30 = vld [vmem:[#allocation5 + $0xa8] sm:$0xff]  ;;  %v65_v31 = vld [vmem:[#allocation5 + $0xb8] sm:$0xff]  ;;  %v696_v32 = vpack.c.bf16 %v60_v29, %v58_v28  ;;  %v62_v34 = vld [vmem:[#allocation5 + $0xa0] sm:$0xff]  ;;  %v821_v25 = vmov 2131351028  }
  0x2e   :  { %685 = vmatpush1.bf16.msra.mxu0 %v684_v14  ;;  %v698_v33 = vpack.c.bf16 %v65_v31, %v63_v30  ;;  %v64_v35 = vld [vmem:[#allocation5 + $0xb0] sm:$0xff]  ;;  %v67_v36 = vld [vmem:[#allocation5 + $0xc8] sm:$0xff]  ;;  %v69_v37 = vld [vmem:[#allocation5 + $0xd8] sm:$0xff]  ;;  %v822_v29 = vmov 2102212464  }
  0x2f   :  { %687 = vmatprep.subr.bf16.mxu0 %v686_v15  ;;  %v700_v38 = vpack.c.bf16 %v64_v35, %v62_v34  ;;  %v702_v39 = vpack.c.bf16 %v69_v37, %v67_v36  ;;  %v66_v40 = vld [vmem:[#allocation5 + $0xc0] sm:$0xff]  ;;  %v68_v41 = vld [vmem:[#allocation5 + $0xd0] sm:$0xff]  ;;  %v71_v42 = vld [vmem:[#allocation5 + $0xe8] sm:$0xff]  ;;  %v824_v35 = vmov 1326507024  }
  0x30   :  { %v73_v43 = vld [vmem:[#allocation5 + $0xf8] sm:$0xff]  ;;  %v704_v44 = vpack.c.bf16 %v68_v41, %v66_v40  ;;  %v70_v46 = vld [vmem:[#allocation5 + $0xe0] sm:$0xff]  ;;  %v72_v47 = vld [vmem:[#allocation5 + $0xf0] sm:$0xff] }
  0x31   :  { %v706_v45 = vpack.c.bf16 %v73_v43, %v71_v42  ;;  %v708_v48 = vpack.c.bf16 %v72_v47, %v70_v46  ;;  %v41_v49 = vld [vmem:[#allocation2] sm:$0xff] }
  0x32   :  { %689 = vmatpush1.bf16.msra.mxu0 %v688_v20  ;;  %v74_v53 = vld [vmem:[%s1026_s2] sm:$0x3]  ;;  %s825_s2 = smov [#allocation7]  }
  0x33   :  { %691 = vmatprep.subr.bf16.mxu0 %v690_v21  ;;  %v79_v55 = vrot.slane %v74_v53, %v78_v52  ;;  %v83_v56 = vrot.slane %v74_v53, %v82_v54  ;;  %v819_v21 = vmov 683565275   ;;  %s652_s11 = sshll.u32 %s825_s2, 4  ;;  %s653_s11 = int_to_ptr.vmem [resolvable:$true] %s652_s11 }
  0x34   :  { %s786_s12 = scalar_lea.vmem %s653_s11, 256  ;;  %p791_p3 = scmp.lt.s32.totalorder %s653_s11, %s653_s11 }
  0x35   :  { %p787_p2 = scmp.ne.s32.totalorder %s653_s11, %s786_s12  ;;  %p792_p4 = scmp.lt.s32.totalorder %s786_s12, %s786_s12 }
  0x36   :  { %693 = vmatpush1.bf16.msra.mxu0 %v692_v26 }
  0x37   :  { %695 = vmatprep.subr.bf16.mxu0 %v694_v27  ;;  %p793_p5 = por %p792_p4, %p791_p3 }
  0x39   :  { %p794_p6 = pnand %p793_p5, %p787_p2 }
  0x3a   :  { %697 = vmatpush1.bf16.msra.mxu0 %v696_v32  ;;  %v823_v32 = vmov 920167782  }
  0x3b   :  { %699 = vmatprep.subr.bf16.mxu0 %v698_v33 }
  0x3e   :  { %701 = vmatpush1.bf16.msra.mxu0 %v700_v38 }
  0x3f   :  { %703 = vmatprep.subr.bf16.mxu0 %v702_v39 }
  0x42   :  { %705 = vmatpush1.bf16.msra.mxu0 %v704_v44 }
  0x43   :  { %707 = vmatprep.subr.bf16.mxu0 %v706_v45 }
  0x46   :  { %709 = vmatpush1.bf16.msra.mxu0 %v708_v48 }
  0x49   :  { %151 = vmatmul.mubr.f32.vlgmr.msra.gmra.mrb[0].mxu0 %v41_v49 }
 0x11c   :  { %v152_v57 = vpop.f32.mrb[0].mxu0 }
 0x11d   :  { %v881_v58 = vadd.f32 %v152_v57, %v79_v55  ;;  %v154_v59 = vpop.f32.mrb[1].mxu0 }
 0x11e   :  { %v883_v60 = vadd.f32 %v154_v59, %v83_v56 }
 0x11f   :  { %v219_v61 = vand.u32 2139095040, %v881_v58  ;;  %v216_v62 = vand.u32 2147483647, %v881_v58  ;;  %vm218_vm14 = vcmp.lt.s32.totalorder %v881_v58, 0 }
 0x120   :  { %v322_v63 = vand.u32 2139095040, %v883_v60  ;;  %v319_v0 = vand.u32 2147483647, %v883_v60 }
 0x121   :  { %v220_v1 = vshrl.u32 %v219_v61, 23  ;;  %v223_v4 = vand.u32 8388607, %v216_v62  ;;  %vm217_vm15 = vcmp.le.f32.partialorder %v216_v62, 0.7853982 }
 0x122   :  { %v323_v2 = vshrl.u32 %v322_v63, 23  ;;  %v326_v5 = vand.u32 8388607, %v319_v0 }
 0x123   :  { %v662_v3 = vadd.s32 4294967169, %v220_v1  ;;  %v224_v9 = vor.u32 8388608, %v223_v4 }
 0x124   :  { %v666_v6 = vadd.s32 4294967169, %v323_v2  ;;  %v327_v10 = vor.u32 8388608, %v326_v5 }
 0x125   :  { %v226_v7 = vadd.s32 1, %v662_v3  ;;  %v895_v18 = vshll.u32 %v224_v9, 8 }
 0x126   :  { %v329_v8 = vadd.s32 1, %v666_v6  ;;  %v897_v19 = vshll.u32 %v327_v10, 8 }
 0x127   :  { %vm227_vm0 = vcmp.gt.s32.totalorder %v226_v7, 0 }
 0x128   :  { %v228_v11 = vsel %vm227_vm0, %v226_v7, 0  ;;  %vm330_vm1 = vcmp.gt.s32.totalorder %v329_v8, 0 }
 0x129   :  { %v230_v12 = vand.u32 31, %v228_v11  ;;  %v331_v13 = vsel %vm330_vm1, %v329_v8, 0  ;;  %v229_v14 = vshrl.u32 %v228_v11, 5 }
 0x12a   :  { %v333_v15 = vand.u32 31, %v331_v13  ;;  %v893_v17 = vshrl.u32 %v331_v13, 5 }
 0x12b   :  { %v231_v16 = vsub.s32 32, %v230_v12  ;;  %v233_v22 = vshll.u32 %v819_v21, %v230_v12  ;;  %v236_v24 = vshll.u32 %v820_v23, %v230_v12  ;;  %v239_v26 = vshll.u32 %v821_v25, %v230_v12 }
 0x12c   :  { %v334_v20 = vsub.s32 32, %v333_v15  ;;  %v242_v31 = vshll.u32 %v822_v29, %v230_v12  ;;  %v245_v34 = vshll.u32 %v823_v32, %v230_v12  ;;  %vm248_vm2 = vcmp.lt.s32.totalorder %v229_v14, 1 }
 0x12d   :  { %v234_v27 = vshrl.u32 %v820_v23, %v231_v16  ;;  %v237_v28 = vshrl.u32 %v821_v25, %v231_v16  ;;  %v240_v30 = vshrl.u32 %v822_v29, %v231_v16  ;;  %v243_v33 = vshrl.u32 %v823_v32, %v231_v16 }
 0x12e   :  { %v246_v36 = vshrl.u32 %v824_v35, %v231_v16  ;;  %v232_v37 = vshrl.u32 %v819_v21, %v231_v16  ;;  %vm250_vm3 = vcmp.lt.s32.totalorder %v229_v14, 3  ;;  %vm251_vm4 = vcmp.lt.s32.totalorder %v229_v14, 4 }
 0x12f   :  { %v235_v38 = vor.u32 %v234_v27, %v233_v22  ;;  %v238_v39 = vor.u32 %v237_v28, %v236_v24  ;;  %v241_v40 = vor.u32 %v240_v30, %v239_v26  ;;  %v244_v41 = vor.u32 %v243_v33, %v242_v31 }
 0x130   :  { %v247_v42 = vor.u32 %v246_v36, %v245_v34  ;;  %v337_v51 = vshrl.u32 %v820_v23, %v334_v20  ;;  %vm249_vm5 = vcmp.lt.s32.totalorder %v229_v14, 2  ;;  %v336_v54 = vshll.u32 %v819_v21, %v333_v15 }
 0x131   :  { %v252_v43 = vsel %vm248_vm2, %v232_v37, %v235_v38  ;;  %v253_v44 = vsel %vm251_vm4, %v241_v40, 2102212464  ;;  %v256_v45 = vsel %vm248_vm2, %v235_v38, %v238_v39  ;;  %v260_v46 = vsel %vm248_vm2, %v238_v39, %v241_v40 }
 0x132   :  { %v254_v47 = vsel %vm250_vm3, %v238_v39, %v253_v44  ;;  %v257_v48 = vsel %vm251_vm4, %v244_v41, 920167782  ;;  %v261_v49 = vsel %vm251_vm4, %v247_v42, 1326507024  ;;  %v339_v59 = vshll.u32 %v820_v23, %v333_v15 }
 0x133   :  { %v258_v52 = vsel %vm250_vm3, %v241_v40, %v257_v48  ;;  %v262_v53 = vsel %vm250_vm3, %v244_v41, %v261_v49  ;;  %v255_v55 = vsel %vm249_vm5, %v252_v43, %v254_v47  ;;  %v338_v3 = vor.u32 %v337_v51, %v336_v54 }
 0x134   :  { %v259_v56 = vsel %vm249_vm5, %v256_v45, %v258_v52  ;;  %v263_v57 = vsel %vm249_vm5, %v260_v46, %v262_v53  ;;  %v340_v4 = vshrl.u32 %v821_v25, %v334_v20  ;;  %v342_v5 = vshll.u32 %v821_v25, %v333_v15 }
 0x135   :  { %v900_v61 = vmul.u32.u64.low %v895_v18, %v263_v57  ;;  %v901_v63 = vmul.u32.u64.high %v895_v18, %v263_v57, %v900_v61  ;;  %v904_v1 = vmul.u32.u64.low %v895_v18, %v259_v56  ;;  %v905_v2 = vmul.u32.u64.high %v895_v18, %v259_v56, %v904_v1 }
 0x136   :  { %v343_v6 = vshrl.u32 %v822_v29, %v334_v20  ;;  %v335_v7 = vshrl.u32 %v819_v21, %v334_v20  ;;  %v345_v8 = vshll.u32 %v822_v29, %v333_v15  ;;  %v346_v9 = vshrl.u32 %v823_v32, %v334_v20 }
 0x137   :  { %v349_v10 = vshrl.u32 %v824_v35, %v334_v20  ;;  %v271_v11 = vmul.u32 %v895_v18, %v255_v55  ;;  %v341_v12 = vor.u32 %v340_v4, %v339_v59  ;;  %v348_v14 = vshll.u32 %v823_v32, %v333_v15 }
 0x138   :  { %v344_v13 = vor.u32 %v343_v6, %v342_v5  ;;  %vm273_vm6 = vc.u32 %v901_v63, %v904_v1  ;;  %v274_v16 = vadd.s32 1, %v905_v2  ;;  %v347_v22 = vor.u32 %v346_v9, %v345_v8 }
 0x139   :  { %vm351_vm7 = vcmp.lt.s32.totalorder %v893_v17, 1  ;;  %v350_v23 = vor.u32 %v349_v10, %v348_v14  ;;  %vm353_vm8 = vcmp.lt.s32.totalorder %v893_v17, 3  ;;  %vm354_vm9 = vcmp.lt.s32.totalorder %v893_v17, 4 }
 0x13a   :  { %v359_v21 = vsel %vm351_vm7, %v338_v3, %v341_v12  ;;  %v275_v20 = vsel %vm273_vm6, %v274_v16, %v905_v2  ;;  %v356_v24 = vsel %vm354_vm9, %v344_v13, 2102212464  ;;  %v360_v18 = vsel %vm354_vm9, %v347_v22, 920167782 }
 0x13b   :  { %v363_v25 = vsel %vm351_vm7, %v341_v12, %v344_v13  ;;  %v276_v26 = vadd.s32 %v275_v20, %v271_v11  ;;  %vm352_vm10 = vcmp.lt.s32.totalorder %v893_v17, 2  ;;  %v361_v15 = vsel %vm353_vm8, %v344_v13, %v360_v18 }
 0x13c   :  { %v364_v27 = vsel %vm354_vm9, %v350_v23, 1326507024  ;;  %v355_v28 = vsel %vm351_vm7, %v335_v7, %v338_v3  ;;  %v357_v29 = vsel %vm353_vm8, %v341_v12, %v356_v24  ;;  %v362_v30 = vsel %vm352_vm10, %v359_v21, %v361_v15 }
 0x13d   :  { %v365_v31 = vsel %vm353_vm8, %v347_v22, %v364_v27  ;;  %v277_v32 = vadd.s32 536870912, %v276_v26  ;;  %v916_v34 = vmul.u32.u64.low %v897_v19, %v362_v30  ;;  %v917_v35 = vmul.u32.u64.high %v897_v19, %v362_v30, %v916_v34 }
 0x13e   :  { %v366_v33 = vsel %vm352_vm10, %v363_v25, %v365_v31  ;;  %v358_v39 = vsel %vm352_vm10, %v355_v28, %v357_v29  ;;  %v272_v56 = vadd.s32 %v904_v1, %v901_v63  ;;  %v632_v16 = vmul.f32 0.70710677, %v881_v58 }
 0x13f   :  { %v920_v36 = vmul.u32.u64.low %v897_v19, %v366_v33  ;;  %v921_v37 = vmul.u32.u64.high %v897_v19, %v366_v33, %v920_v36  ;;  %v278_v38 = vshrl.u32 %v277_v32, 30  ;;  %v377_v17 = vadd.s32 1, %v917_v35 }
 0x140   :  { %v374_v41 = vmul.u32 %v897_v19, %v358_v39  ;;  %730 = verf.f32 %v632_v16  ;;  %v158_v28 = vand.u32 127, %v76_v50  ;;  %vm321_vm3 = vcmp.lt.s32.totalorder %v883_v60, 0 }
 0x141   :  { %v279_v40 = vshll.u32 %v278_v38, 30  ;;  %vm376_vm11 = vc.u32 %v921_v37, %v916_v34  ;;  %v375_v12 = vadd.s32 %v916_v34, %v921_v37  ;;  %v302_v1 = vsub.s32 4, %v278_v38 }
 0x142   :  { %v378_v43 = vsel %vm376_vm11, %v377_v17, %v917_v35  ;;  %v633_v34 = vmul.f32 0.70710677, %v883_v60  ;;  %v936_v36 = vadd.s32 128, %v158_v28  ;;  %vm162_vm0 = vcmp.ge.s32.totalorder %v158_v28, 16 }
 0x143   :  { %v280_v42 = vsub.s32 %v276_v26, %v279_v40  ;;  %v379_v44 = vadd.s32 %v378_v43, %v374_v41  ;;  %v303_v26 = vsel %vm218_vm14, %v302_v1, %v278_v38  ;;  %vm164_vm1 = vcmp.lt.s32.totalorder %v158_v28, 32 }
 0x144   :  { %v305_v29 = vsel %vm217_vm15, 0, %v303_v26  ;;  %vm176_vm2 = vcmp.ge.s32.totalorder %v158_v28, 80  ;;  %vm941_vm4 = vcmp.le.f32.partialorder %v319_v0, 0.7853982  ;;  %vm178_vm5 = vcmp.lt.s32.totalorder %v158_v28, 96  ;;  %vm950_vm9 = vmand %vm162_vm0, %vm164_vm1 }
 0x145   :  { %v282_v45 = vsub.s32 0, %v280_v42  ;;  %v380_v46 = vadd.s32 536870912, %v379_v44  ;;  %v515_v35 = vadd.s32 3, %v305_v29  ;;  %v309_v40 = vand.u32 3, %v305_v29  ;;  %vm957_vm10 = vmand %vm176_vm2, %vm178_vm5 }
 0x146   :  { %vm168_vm6 = vcmp.ge.s32.totalorder %v158_v28, 64  ;;  %vm170_vm7 = vcmp.lt.s32.totalorder %v158_v28, 80  ;;  %vm160_vm8 = vcmp.lt.s32.totalorder %v158_v28, 16  ;;  %vm193_vm11 = vcmp.ge.s32.totalorder %v936_v36, 144  ;;  %vm182_vm1 = vmor %vm950_vm9, %vm957_vm10 }
 0x147   :  { %v663_v47 = vmin.u32 %v282_v45, %v280_v42  ;;  %v381_v48 = vshrl.u32 %v380_v46, 30  ;;  %v516_v41 = vand.u32 3, %v515_v35  ;;  %vm310_vm2 = vcmp.lt.s32.totalorder %v309_v40, 2 }
 0x148   :  { %vm308_vm5 = vweird.f32 %v881_v58 }
 0x149   :  { %v284_v49 = vclz %v663_v47  ;;  %v382_v51 = vshll.u32 %v381_v48, 30  ;;  %v405_v33 = vsub.s32 4, %v381_v48  ;;  %v630_v47 = vmul.f32 0.5, %v881_v58 }
 0x14a   :  { %v731_v39 = vpop.eup %730  ;;  %vm518_vm0 = vcmp.eq.s32.totalorder %v516_v41, 0 }
 0x14b   :  { %v664_v52 = vadd.s32 4294967294, %v284_v49  ;;  %v383_v53 = vsub.s32 %v379_v44, %v382_v51  ;;  %v406_v38 = vsel %vm321_vm3, %v405_v33, %v381_v48  ;;  %v636_v48 = vadd.f32 1.0, %v731_v39 }
 0x14c   :  { %v408_v43 = vsel %vm941_vm4, 0, %v406_v38 }
 0x14d   :  { %vm665_vm12 = vcmp.lt.s32.totalorder %v664_v52, 0  ;;  %v385_v55 = vsub.s32 0, %v383_v53 }
 0x14e   :  { %v287_v54 = vsel %vm665_vm12, 0, %v664_v52  ;;  %vm172_vm12 = vmand %vm168_vm6, %vm170_vm7  ;;  %vm195_vm6 = vcmp.lt.s32.totalorder %v936_v36, 160  ;;  %vm209_vm7 = vcmp.ge.s32.totalorder %v936_v36, 208 }
 0x14f   :  { %v288_v19 = vsub.s32 32, %v287_v54  ;;  %v292_v57 = vsub.s32 4294967266, %v287_v54  ;;  %v667_v59 = vmin.u32 %v385_v55, %v383_v53  ;;  %v289_v61 = vshll.u32 %v280_v42, %v287_v54 }
 0x151   :  { %v290_v2 = vshrl.u32 %v272_v56, %v288_v19  ;;  %v293_v3 = vadd.s32 127, %v292_v57  ;;  %v387_v4 = vclz %v667_v59  ;;  %v638_v59 = vmul.f32 %v636_v48, %v630_v47 }
 0x153   :  { %v291_v5 = vor.u32 %v290_v2, %v289_v61  ;;  %v294_v6 = vshll.u32 %v293_v3, 23  ;;  %v668_v7 = vadd.s32 4294967294, %v387_v4  ;;  %v412_v4 = vand.u32 3, %v408_v43 }
 0x155   :  { %v295_v8 = vor.u32 4788187, %v294_v6  ;;  %vm669_vm13 = vcmp.lt.s32.totalorder %v668_v7, 0  ;;  %v298_v10 = vcvt.s32.f32 %v291_v5 }
 0x156   :  { %v390_v11 = vsel %vm669_vm13, 0, %v668_v7  ;;  %vm311_vm13 = vcmp.eq.s32.totalorder %v309_v40, 0 }
 0x157   :  { %v296_v9 = vand.u32 2147483647, %v295_v8  ;;  %v391_v13 = vsub.s32 32, %v390_v11  ;;  %v395_v14 = vsub.s32 4294967266, %v390_v11  ;;  %v392_v22 = vshll.u32 %v383_v53, %v390_v11 }
 0x158   :  { %v619_v53 = vadd.s32 3, %v408_v43 }
 0x159   :  { %v299_v63 = vmul.f32 %v298_v10, %v296_v9  ;;  %v393_v23 = vshrl.u32 %v375_v12, %v391_v13  ;;  %v396_v21 = vadd.s32 127, %v395_v14 }
 0x15a   :  { %v620_v5 = vand.u32 3, %v619_v53 }
 0x15b   :  { %v300_v20 = vxor.u32 2147483648, %v299_v63  ;;  %v394_v24 = vor.u32 %v393_v23, %v392_v22  ;;  %v397_v18 = vshll.u32 %v396_v21, 23 }
 0x15d   :  { %v301_v25 = vsel %vm218_vm14, %v300_v20, %v299_v63  ;;  %v398_v27 = vor.u32 4788187, %v397_v18  ;;  %v401_v31 = vcvt.s32.f32 %v394_v24  ;;  %vm314_vm14 = vcmp.eq.s32.totalorder %v309_v40, 2 }
 0x15e   :  { %v304_v15 = vsel %vm217_vm15, %v881_v58, %v301_v25  ;;  %vm521_vm15 = vcmp.eq.s32.totalorder %v516_v41, 2  ;;  %v631_v63 = vmul.f32 0.5, %v883_v60 }
 0x15f   :  { %732 = vcosq.f32 %v304_v15  ;;  %v399_v30 = vand.u32 2147483647, %v398_v27 }
 0x160   :  { %734 = vsinq.f32 %v304_v15 }
 0x161   :  { %v402_v32 = vmul.f32 %v401_v31, %v399_v30  ;;  %736 = verf.f32 %v633_v34 }
 0x163   :  { %v403_v62 = vxor.u32 2147483648, %v402_v32 }
 0x165   :  { %v404_v37 = vsel %vm321_vm3, %v403_v62, %v402_v32  ;;  %vm517_vm3 = vcmp.lt.s32.totalorder %v516_v41, 2 }
 0x166   :  { %v407_v17 = vsel %vm941_vm4, %v883_v60, %v404_v37  ;;  %vm968_vm4 = vmor %vm160_vm8, %vm172_vm12  ;;  %vm201_vm8 = vcmp.ge.s32.totalorder %v936_v36, 192  ;;  %vm203_vm12 = vcmp.lt.s32.totalorder %v936_v36, 208 }
 0x167   :  { %738 = vcosq.f32 %v407_v17  ;;  %vm998_vm10 = vmand %vm201_vm8, %vm203_vm12 }
 0x168   :  { %740 = vsinq.f32 %v407_v17 }
 0x169   :  { %v733_v42 = vpop.eup %732 }
 0x16a   :  { %v735_v44 = vpop.eup %734  ;;  %v315_v46 = vxor.u32 2147483648, %v733_v42 }
 0x16b   :  { %v312_v49 = vxor.u32 2147483648, %v735_v44  ;;  %v737_v3 = vpop.eup %736 }
 0x16c   :  { %v316_v51 = vsel %vm314_vm14, %v315_v46, %v735_v44  ;;  %v523_v52 = vsel %vm521_vm15, %v315_v46, %v735_v44  ;;  %vm987_vm14 = vmand %vm193_vm11, %vm195_vm6  ;;  %vm187_vm15 = vcmp.lt.s32.totalorder %v936_v36, 144  ;;  %v637_v12 = vadd.f32 1.0, %v737_v3 }
 0x16d   :  { %v313_v54 = vsel %vm311_vm13, %v733_v42, %v312_v49  ;;  %v520_v55 = vsel %vm518_vm0, %v733_v42, %v312_v49  ;;  %vm211_vm13 = vcmp.lt.s32.totalorder %v936_v36, 224  ;;  %vm417_vm11 = vcmp.eq.s32.totalorder %v412_v4, 2  ;;  %vm207_vm6 = vmor %vm187_vm15, %vm998_vm10 }
 0x16e   :  { %v317_v19 = vsel %vm310_vm2, %v313_v54, %v316_v51  ;;  %v524_v57 = vsel %vm517_vm3, %v520_v55, %v523_v52  ;;  %vm994_vm9 = vmand %vm209_vm7, %vm211_vm13  ;;  %vm625_vm0 = vcmp.eq.s32.totalorder %v620_v5, 2  ;;  %vm622_vm2 = vcmp.eq.s32.totalorder %v620_v5, 0 }
 0x16f   :  { %v318_v61 = vsel %vm308_vm5, nan, %v317_v19  ;;  %v525_v2 = vsel %vm308_vm5, nan, %v524_v57  ;;  %vm215_vm3 = vmor %vm987_vm14, %vm994_vm9  ;;  %vm621_vm5 = vcmp.lt.s32.totalorder %v620_v5, 2  ;;  %vm411_vm7 = vweird.f32 %v883_v60 }
 0x170   :  { %v640_v58 = vsel %vm182_vm1, %v525_v2, %v638_v59  ;;  %vm414_vm1 = vcmp.eq.s32.totalorder %v412_v4, 0  ;;  %v639_v24 = vmul.f32 %v637_v12, %v631_v63 }
 0x171   :  { %v642_v6 = vsel %vm968_vm4, %v318_v61, %v640_v58  ;;  %v739_v7 = vpop.eup %738  ;;  %vm413_vm4 = vcmp.lt.s32.totalorder %v412_v4, 2 }
 0x172   :  { %644 = vst [vmem:[#allocation7] sm:$0xff] %v642_v6  ;;  %v741_v9 = vpop.eup %740  ;;  %v418_v11 = vxor.u32 2147483648, %v739_v7 }
 0x173   :  { %v415_v14 = vxor.u32 2147483648, %v741_v9 }
 0x174   :  { %v419_v1 = vsel %vm417_vm11, %v418_v11, %v741_v9  ;;  %v627_v16 = vsel %vm625_vm0, %v418_v11, %v741_v9 }
 0x175   :  { %v416_v22 = vsel %vm414_vm1, %v739_v7, %v415_v14  ;;  %v624_v23 = vsel %vm622_vm2, %v739_v7, %v415_v14 }
 0x176   :  { %v420_v21 = vsel %vm413_vm4, %v416_v22, %v419_v1  ;;  %v628_v20 = vsel %vm621_vm5, %v624_v23, %v627_v16 }
 0x177   :  { %v421_v18 = vsel %vm411_vm7, nan, %v420_v21  ;;  %v629_v25 = vsel %vm411_vm7, nan, %v628_v20 }
 0x178   :  { %v641_v26 = vsel %vm215_vm3, %v629_v25, %v639_v24 }
 0x179   :  { %v643_v15 = vsel %vm207_vm6, %v421_v18, %v641_v26 }
 0x17a   :  { %645 = vst [vmem:[#allocation7 + $0x8] sm:$0xff] %v643_v15 }
 0x17b   :  { %797 = shalt.err (!%p794_p6)
}
 0x17c   :  { %s798_s15 = scalar_lea.hbm %s1027_s3, 256 }
 0x17d   :  { %p799_p7 = scmp.ne.s32.totalorder %s1027_s3, %s798_s15  ;;  %p802_p8 = scmp.lt.u32.totalorder %s798_s15, %s1027_s3 }
 0x17f   :  { %p804_p9 = pnand %p802_p8, %p799_p7 }
 0x181   :  { %807 = shalt.err (!%p804_p9)
}
 0x182   :  { %655 = dma.vmem_to_hbm [thread:$0]  %s653_s11, 256, %s1027_s3, [#allocation4]  }
 0x183   :  { %812 = dma.done.wait [#allocation4], 256  }
 0x184   :  { %813 = vsyncadd [#allocation4], 4294967040 }
 0x185   :  { %659 = vsyncpa [#allocation3], 1 }
 0x186   :  { %660 = vsyncpa [#allocation6], 1 }
 0x187   :  { %661 = vsyncpa [#allocation4], 1 }

</bundles_post_ra>
